<compile_context>
chip_gen: v6e
topology: v6e:2x2x1
jax: 0.10.0
libtpu: 0.0.40
codegen_flags: <defaults>
</compile_context>

<pallas_src>
import functools
import math

import jax
import jax.numpy as jnp
from jax.experimental import pallas as pl
from jax.experimental.pallas import tpu as pltpu

# hparams (r9y9 wavenet_vocoder defaults)
NUM_CLASSES = 256                 # hparams.quantize_channels
LOG_SCALE_MIN = math.log(1e-14)   # hparams.log_scale_min


def _softplus(x):
    # numerically-stable softplus = log(1 + exp(x))
    return jnp.maximum(x, 0.0) + jnp.log1p(jnp.exp(-jnp.abs(x)))


def _dml_loss_kernel(yhat_ref, y_ref, mask_ref, out_ref, *,
                     num_classes, log_scale_min, chunk, num_chunks):
    # yhat_ref: (1, 3, nr_mix, TN) ; y_ref / mask_ref / out_ref: (1, 1, TN)
    half_bin = 1.0 / (num_classes - 1)
    log_half_range = math.log((num_classes - 1) / 2.0)
    log_thresh = math.log(1e-5)

    def process(start):
        sl = pl.ds(start, chunk)                                   # static slice
        logit = yhat_ref[0, 0, :, sl].astype(jnp.float32)          # (nr_mix, chunk)
        means = yhat_ref[0, 1, :, sl].astype(jnp.float32)          # (nr_mix, chunk)
        log_scales = jnp.maximum(
            yhat_ref[0, 2, :, sl].astype(jnp.float32), log_scale_min)
        y = y_ref[0, :, sl].astype(jnp.float32)                    # (1, chunk)
        m = mask_ref[0, :, sl].astype(jnp.float32)                 # (1, chunk)

        centered = y - means                                       # (nr_mix, chunk)
        inv_stdv = jnp.exp(-log_scales)
        plus_in = inv_stdv * (centered + half_bin)
        min_in = inv_stdv * (centered - half_bin)
        mid_in = inv_stdv * centered

        sp_plus = _softplus(plus_in)
        sp_min = _softplus(min_in)
        sp_mid = _softplus(mid_in)

        log_cdf_plus = plus_in - sp_plus             # log sigmoid(plus_in)
        log_one_minus_cdf_min = -sp_min              # log(1 - sigmoid(min_in))
        log_pdf_mid = mid_in - log_scales - 2.0 * sp_mid

        # log(cdf_plus - cdf_min) in the log domain (1 exp + 1 log1p):
        #   log_cdf_min = min_in - softplus(min_in)
        diff = jnp.minimum((min_in - sp_min) - log_cdf_plus, 0.0)
        log_cdf_delta = log_cdf_plus + jnp.log1p(-jnp.exp(diff))

        inner_inner = jnp.where(log_cdf_delta > log_thresh,
                                log_cdf_delta,
                                log_pdf_mid - log_half_range)
        inner = jnp.where(y > 0.999, log_one_minus_cdf_min, inner_inner)
        lp = jnp.where(y < -0.999, log_cdf_plus, inner)            # (nr_mix, chunk)

        # loss = -logsumexp(lp + log_softmax(logit))  ==  LSE(logit) - LSE(lp + logit)
        a = lp + logit
        amax = jnp.max(a, axis=0, keepdims=True)
        lse_a = amax + jnp.log(jnp.sum(jnp.exp(a - amax), axis=0, keepdims=True))
        lmax = jnp.max(logit, axis=0, keepdims=True)
        lse_l = lmax + jnp.log(jnp.sum(jnp.exp(logit - lmax), axis=0, keepdims=True))
        loss = lse_l - lse_a                                       # (1, chunk)

        # NaN-safe masked store: the last (partial) time block reads stale lanes
        # past T; where() keeps any Inf/NaN there from leaking (Pallas drops the
        # OOB part of this store anyway).
        out_ref[0, :, sl] = jnp.where(m > 0.0, loss * m, 0.0)

    for c in range(num_chunks):      # static unroll; chunk bodies are independent
        process(c * chunk)


def discretized_mixture_logistic_loss(y_hat, y, mask,
                                      num_classes=NUM_CLASSES,
                                      log_scale_min=LOG_SCALE_MIN,
                                      tile_t=8192):
    """Equivalent of DiscretizedMixturelogisticLoss.forward (mask provided).

    y_hat: (B, 3*nr_mix, T)   (f32 or bf16; cast to f32 inside the kernel)
    y    : (B, T, 1)
    mask : (B, T, 1)
    returns scalar float32
    """
    B, C, T = y_hat.shape
    assert C % 3 == 0
    nr_mix = C // 3

    # Free views only (no HBM copies): time stays on lanes (128-lane dense).
    yhat4 = y_hat.reshape(B, 3, nr_mix, T)
    y_t = jnp.reshape(y, (B, 1, T))
    m_t = jnp.reshape(mask, (B, 1, T))

    # Time tiling: lane-dense tiles, NO padding; last block may be partially OOB.
    tile_t = max(128, (int(tile_t) // 128) * 128)
    if T >= 256:
        TN = min(tile_t, (T // 256) * 256)   # multiple of 128 (usually 256)
    else:
        TN = T                               # tiny sequence: full-extent block
    num_t = -(-T // TN)                      # ceil-div grid over time

    # In-kernel chunking to bound the vreg live set (no VMEM spill storms).
    if TN % 256 == 0:
        CH = 256
    elif TN % 128 == 0:
        CH = 128
    else:
        CH = TN
    num_chunks = TN // CH

    kernel = functools.partial(_dml_loss_kernel,
                               num_classes=num_classes,
                               log_scale_min=float(log_scale_min),
                               chunk=CH, num_chunks=num_chunks)

    masked_losses = pl.pallas_call(
        kernel,
        out_shape=jax.ShapeDtypeStruct((B, 1, T), jnp.float32),
        grid_spec=pltpu.PrefetchScalarGridSpec(
            num_scalar_prefetch=0,
            grid=(B, num_t),
            in_specs=[
                pl.BlockSpec((1, 3, nr_mix, TN), lambda b, t: (b, 0, 0, t)),
                pl.BlockSpec((1, 1, TN), lambda b, t: (b, 0, t)),
                pl.BlockSpec((1, 1, TN), lambda b, t: (b, 0, t)),
            ],
            out_specs=pl.BlockSpec((1, 1, TN), lambda b, t: (b, 0, t)),
        ),
        compiler_params=pltpu.CompilerParams(
            dimension_semantics=("parallel", "parallel"),
            vmem_limit_bytes=32 * 1024 * 1024),
    )(yhat4, y_t, m_t)

    loss_sum = jnp.sum(masked_losses)             # OOB lanes never reach HBM
    mask_sum = jnp.sum(mask.astype(jnp.float32))
    return (loss_sum / mask_sum).astype(jnp.float32)


def sequence_mask(lengths, max_len=None):
    # (B, max_len) float mask, mirrors the PyTorch sequence_mask()
    if max_len is None:
        max_len = int(jnp.max(lengths))
    seq = jnp.arange(max_len)[None, :]
    return (seq < lengths[:, None]).astype(jnp.float32)


def dml_loss(inputs, target, lengths=None, mask=None, max_len=None,
             num_classes=NUM_CLASSES, log_scale_min=LOG_SCALE_MIN, tile_t=8192):
    """Mirror of DiscretizedMixturelogisticLoss.forward (lengths OR mask)."""
    if lengths is None and mask is None:
        raise RuntimeError('Should provide either lengths or mask')
    if mask is None:
        if max_len is None:
            max_len = int(target.shape[1])
        mask = sequence_mask(lengths, max_len)[..., None]
    return discretized_mixture_logistic_loss(
        inputs, target, mask, num_classes=num_classes,
        log_scale_min=log_scale_min, tile_t=tile_t)


def _reference_loss(y_hat, y, mask, num_classes=NUM_CLASSES,
                    log_scale_min=LOG_SCALE_MIN):
    # plain-JAX mirror of the PyTorch discretized_mix_logistic_loss + masked mean
    B, C, T = y_hat.shape
    nr_mix = C // 3
    yh = jnp.transpose(y_hat.astype(jnp.float32), (0, 2, 1))
    logit_probs = yh[:, :, :nr_mix]
    means = yh[:, :, nr_mix:2 * nr_mix]
    log_scales = jnp.maximum(yh[:, :, 2 * nr_mix:], log_scale_min)
    yb = jnp.broadcast_to(y.astype(jnp.float32), means.shape)
    centered = yb - means
    inv_stdv = jnp.exp(-log_scales)
    plus_in = inv_stdv * (centered + 1.0 / (num_classes - 1))
    min_in = inv_stdv * (centered - 1.0 / (num_classes - 1))
    cdf_plus = jax.nn.sigmoid(plus_in)
    cdf_min = jax.nn.sigmoid(min_in)
    log_cdf_plus = plus_in - jax.nn.softplus(plus_in)
    log_one_minus_cdf_min = -jax.nn.softplus(min_in)
    cdf_delta = cdf_plus - cdf_min
    mid_in = inv_stdv * centered
    log_pdf_mid = mid_in - log_scales - 2.0 * jax.nn.softplus(mid_in)
    iic = (cdf_delta > 1e-5).astype(jnp.float32)
    iio = iic * jnp.log(jnp.maximum(cdf_delta, 1e-12)) + (1 - iic) * (
        log_pdf_mid - jnp.log((num_classes - 1) / 2.0))
    ic = (yb > 0.999).astype(jnp.float32)
    io = ic * log_one_minus_cdf_min + (1 - ic) * iio
    c = (yb < -0.999).astype(jnp.float32)
    log_probs = c * log_cdf_plus + (1 - c) * io
    log_probs = log_probs + jax.nn.log_softmax(logit_probs, axis=-1)
    losses = -jax.nn.logsumexp(log_probs, axis=-1, keepdims=True)  # (B,T,1)
    return jnp.sum(losses * mask) / jnp.sum(mask)


if __name__ == "__main__":
    key = jax.random.PRNGKey(0)
    nr_mix = 10
    C = 3 * nr_mix

    def make_case(k, B, T, lengths):
        k1, k2 = jax.random.split(k)
        y_hat = jax.random.normal(k1, (B, C, T), dtype=jnp.float32)
        y = jax.random.uniform(k2, (B, T, 1), dtype=jnp.float32,
                               minval=-1.0, maxval=1.0)
        m = sequence_mask(jnp.array(lengths, dtype=jnp.int32), max_len=T)[..., None]
        return y_hat, y, m

    # (a) tiny sequence: single full-extent block, single chunk
    y_hat, y, mask = make_case(jax.random.fold_in(key, 0), 2, 16, [16, 12])
    loss = jax.block_until_ready(discretized_mixture_logistic_loss(y_hat, y, mask))
    ref = _reference_loss(y_hat, y, mask)
    assert jnp.allclose(loss, ref, rtol=1e-4, atol=1e-4), (loss, ref)

    # (b) T not a multiple of 128: block equals full time dim
    y_hat, y, mask = make_case(jax.random.fold_in(key, 1), 2, 200, [200, 150])
    loss = jax.block_until_ready(discretized_mixture_logistic_loss(y_hat, y, mask))
    ref = _reference_loss(y_hat, y, mask)
    assert jnp.allclose(loss, ref, rtol=1e-4, atol=1e-4), (loss, ref)

    # (c) multi-tile grid with a partially out-of-bounds last block + chunk loop
    y_hat, y, mask = make_case(jax.random.fold_in(key, 2), 2, 640, [640, 500])
    loss = jax.block_until_ready(
        discretized_mixture_logistic_loss(y_hat, y, mask, tile_t=512))
    ref = _reference_loss(y_hat, y, mask)
    assert jnp.allclose(loss, ref, rtol=1e-4, atol=1e-4), (loss, ref)

    # (d) lengths-based API path (mirrors the nn.Module forward signature)
    loss_d = jax.block_until_ready(
        dml_loss(y_hat, y, lengths=jnp.array([640, 500], dtype=jnp.int32),
                 max_len=640))
    assert jnp.allclose(loss_d, ref, rtol=1e-4, atol=1e-4), (loss_d, ref)

    print("KERNEL_OK")
</pallas_src>

<mosaic_0001>
module attributes {stable_mosaic.version = 11 : i64} {
  func.func @_dml_loss_kernel(%arg0: i32, %arg1: i32, %arg2: memref<1x3x10x16xf32, #tpu.memory_space<vmem>>, %arg3: memref<1x1x16xf32, #tpu.memory_space<vmem>>, %arg4: memref<1x1x16xf32, #tpu.memory_space<vmem>>, %arg5: memref<1x1x16xf32, #tpu.memory_space<vmem>>) attributes {dimension_semantics = [#tpu.dimension_semantics<parallel>, #tpu.dimension_semantics<parallel>], iteration_bounds = array<i64: 2, 1>, scalar_prefetch = 0 : i64, scratch_operands = 0 : i64, tpu.core_type = #tpu.core_type<tc>, window_params = [{transform_indices = @transform_0, window_bounds = array<i64: 1, 3, 10, 16>}, {transform_indices = @transform_1, window_bounds = array<i64: 1, 1, 16>}, {transform_indices = @transform_2, window_bounds = array<i64: 1, 1, 16>}, {transform_indices = @transform_3, window_bounds = array<i64: 1, 1, 16>}]} {
    %c0 = arith.constant 0 : index
    %c0_0 = arith.constant 0 : index
    %c0_1 = arith.constant 0 : index
    %c0_2 = arith.constant 0 : index
    %0 = vector.load %arg2[%c0, %c0_0, %c0_1, %c0_2] : memref<1x3x10x16xf32, #tpu.memory_space<vmem>>, vector<1x1x10x16xf32>
    %1 = vector.shape_cast %0 : vector<1x1x10x16xf32> to vector<10x16xf32>
    %c0_3 = arith.constant 0 : index
    %c1 = arith.constant 1 : index
    %c0_4 = arith.constant 0 : index
    %c0_5 = arith.constant 0 : index
    %2 = vector.load %arg2[%c0_3, %c1, %c0_4, %c0_5] : memref<1x3x10x16xf32, #tpu.memory_space<vmem>>, vector<1x1x10x16xf32>
    %3 = vector.shape_cast %2 : vector<1x1x10x16xf32> to vector<10x16xf32>
    %c0_6 = arith.constant 0 : index
    %c2 = arith.constant 2 : index
    %c0_7 = arith.constant 0 : index
    %c0_8 = arith.constant 0 : index
    %4 = vector.load %arg2[%c0_6, %c2, %c0_7, %c0_8] : memref<1x3x10x16xf32, #tpu.memory_space<vmem>>, vector<1x1x10x16xf32>
    %5 = vector.shape_cast %4 : vector<1x1x10x16xf32> to vector<10x16xf32>
    %cst = arith.constant -32.2361908 : f32
    %6 = vector.broadcast %cst : f32 to vector<10x16xf32>
    %7 = arith.maximumf %5, %6 : vector<10x16xf32>
    %c0_9 = arith.constant 0 : index
    %c0_10 = arith.constant 0 : index
    %c0_11 = arith.constant 0 : index
    %8 = vector.load %arg3[%c0_9, %c0_10, %c0_11] : memref<1x1x16xf32, #tpu.memory_space<vmem>>, vector<1x1x16xf32>
    %9 = vector.shape_cast %8 : vector<1x1x16xf32> to vector<1x16xf32>
    %c0_12 = arith.constant 0 : index
    %c0_13 = arith.constant 0 : index
    %c0_14 = arith.constant 0 : index
    %10 = vector.load %arg4[%c0_12, %c0_13, %c0_14] : memref<1x1x16xf32, #tpu.memory_space<vmem>>, vector<1x1x16xf32>
    %11 = vector.shape_cast %10 : vector<1x1x16xf32> to vector<1x16xf32>
    %12 = vector.broadcast %9 : vector<1x16xf32> to vector<10x16xf32>
    %13 = arith.subf %12, %3 : vector<10x16xf32>
    %cst_15 = arith.constant 0.000000e+00 : f32
    %14 = vector.broadcast %cst_15 : f32 to vector<10x16xf32>
    %15 = arith.subf %14, %7 : vector<10x16xf32>
    %16 = math.exp %15 : vector<10x16xf32>
    %cst_16 = arith.constant 0.00392156886 : f32
    %17 = vector.broadcast %cst_16 : f32 to vector<10x16xf32>
    %18 = arith.addf %13, %17 : vector<10x16xf32>
    %19 = arith.mulf %16, %18 : vector<10x16xf32>
    %cst_17 = arith.constant 0.00392156886 : f32
    %20 = vector.broadcast %cst_17 : f32 to vector<10x16xf32>
    %21 = arith.subf %13, %20 : vector<10x16xf32>
    %22 = arith.mulf %16, %21 : vector<10x16xf32>
    %23 = arith.mulf %16, %13 : vector<10x16xf32>
    %cst_18 = arith.constant 0.000000e+00 : f32
    %24 = vector.broadcast %cst_18 : f32 to vector<10x16xf32>
    %25 = arith.maximumf %19, %24 : vector<10x16xf32>
    %26 = math.absf %19 : vector<10x16xf32>
    %cst_19 = arith.constant 0.000000e+00 : f32
    %27 = vector.broadcast %cst_19 : f32 to vector<10x16xf32>
    %28 = arith.subf %27, %26 : vector<10x16xf32>
    %29 = math.exp %28 : vector<10x16xf32>
    %30 = math.log1p %29 : vector<10x16xf32>
    %31 = arith.addf %25, %30 : vector<10x16xf32>
    %cst_20 = arith.constant 0.000000e+00 : f32
    %32 = vector.broadcast %cst_20 : f32 to vector<10x16xf32>
    %33 = arith.maximumf %22, %32 : vector<10x16xf32>
    %34 = math.absf %22 : vector<10x16xf32>
    %cst_21 = arith.constant 0.000000e+00 : f32
    %35 = vector.broadcast %cst_21 : f32 to vector<10x16xf32>
    %36 = arith.subf %35, %34 : vector<10x16xf32>
    %37 = math.exp %36 : vector<10x16xf32>
    %38 = math.log1p %37 : vector<10x16xf32>
    %39 = arith.addf %33, %38 : vector<10x16xf32>
    %cst_22 = arith.constant 0.000000e+00 : f32
    %40 = vector.broadcast %cst_22 : f32 to vector<10x16xf32>
    %41 = arith.maximumf %23, %40 : vector<10x16xf32>
    %42 = math.absf %23 : vector<10x16xf32>
    %cst_23 = arith.constant 0.000000e+00 : f32
    %43 = vector.broadcast %cst_23 : f32 to vector<10x16xf32>
    %44 = arith.subf %43, %42 : vector<10x16xf32>
    %45 = math.exp %44 : vector<10x16xf32>
    %46 = math.log1p %45 : vector<10x16xf32>
    %47 = arith.addf %41, %46 : vector<10x16xf32>
    %48 = arith.subf %19, %31 : vector<10x16xf32>
    %cst_24 = arith.constant 0.000000e+00 : f32
    %49 = vector.broadcast %cst_24 : f32 to vector<10x16xf32>
    %50 = arith.subf %49, %39 : vector<10x16xf32>
    %51 = arith.subf %23, %7 : vector<10x16xf32>
    %cst_25 = arith.constant 2.000000e+00 : f32
    %52 = vector.broadcast %cst_25 : f32 to vector<10x16xf32>
    %53 = arith.mulf %52, %47 : vector<10x16xf32>
    %54 = arith.subf %51, %53 : vector<10x16xf32>
    %55 = arith.subf %22, %39 : vector<10x16xf32>
    %56 = arith.subf %55, %48 : vector<10x16xf32>
    %cst_26 = arith.constant 0.000000e+00 : f32
    %57 = vector.broadcast %cst_26 : f32 to vector<10x16xf32>
    %58 = arith.minimumf %56, %57 : vector<10x16xf32>
    %59 = math.exp %58 : vector<10x16xf32>
    %cst_27 = arith.constant 0.000000e+00 : f32
    %60 = vector.broadcast %cst_27 : f32 to vector<10x16xf32>
    %61 = arith.subf %60, %59 : vector<10x16xf32>
    %62 = math.log1p %61 : vector<10x16xf32>
    %63 = arith.addf %48, %62 : vector<10x16xf32>
    %cst_28 = arith.constant -11.5129251 : f32
    %64 = vector.broadcast %cst_28 : f32 to vector<10x16xf32>
    %65 = arith.cmpf ogt, %63, %64 : vector<10x16xf32>
    %cst_29 = arith.constant 4.8481164 : f32
    %66 = vector.broadcast %cst_29 : f32 to vector<10x16xf32>
    %67 = arith.subf %54, %66 : vector<10x16xf32>
    %68 = arith.select %65, %63, %67 : vector<10x16xi1>, vector<10x16xf32>
    %cst_30 = arith.constant 9.990000e-01 : f32
    %69 = vector.broadcast %cst_30 : f32 to vector<1x16xf32>
    %70 = arith.cmpf ogt, %9, %69 : vector<1x16xf32>
    %71 = vector.shape_cast %70 : vector<1x16xi1> to vector<1x16xi1>
    %72 = vector.broadcast %71 : vector<1x16xi1> to vector<10x16xi1>
    %73 = arith.select %72, %50, %68 : vector<10x16xi1>, vector<10x16xf32>
    %cst_31 = arith.constant -9.990000e-01 : f32
    %74 = vector.broadcast %cst_31 : f32 to vector<1x16xf32>
    %75 = arith.cmpf olt, %9, %74 : vector<1x16xf32>
    %76 = vector.shape_cast %75 : vector<1x16xi1> to vector<1x16xi1>
    %77 = vector.broadcast %76 : vector<1x16xi1> to vector<10x16xi1>
    %78 = arith.select %77, %48, %73 : vector<10x16xi1>, vector<10x16xf32>
    %79 = arith.addf %78, %1 : vector<10x16xf32>
    %cst_32 = arith.constant dense<0xFF800000> : vector<16xf32>
    %80 = vector.multi_reduction <maximumf>, %79, %cst_32 [0] : vector<10x16xf32> to vector<16xf32>
    %81 = vector.shape_cast %80 : vector<16xf32> to vector<1x16xf32>
    %82 = vector.broadcast %81 : vector<1x16xf32> to vector<10x16xf32>
    %83 = arith.subf %79, %82 : vector<10x16xf32>
    %84 = math.exp %83 : vector<10x16xf32>
    %cst_33 = arith.constant dense<0.000000e+00> : vector<16xf32>
    %85 = vector.multi_reduction <add>, %84, %cst_33 [0] : vector<10x16xf32> to vector<16xf32>
    %86 = vector.shape_cast %85 : vector<16xf32> to vector<1x16xf32>
    %87 = math.log %86 : vector<1x16xf32>
    %88 = arith.addf %81, %87 : vector<1x16xf32>
    %cst_34 = arith.constant dense<0xFF800000> : vector<16xf32>
    %89 = vector.multi_reduction <maximumf>, %1, %cst_34 [0] : vector<10x16xf32> to vector<16xf32>
    %90 = vector.shape_cast %89 : vector<16xf32> to vector<1x16xf32>
    %91 = vector.broadcast %90 : vector<1x16xf32> to vector<10x16xf32>
    %92 = arith.subf %1, %91 : vector<10x16xf32>
    %93 = math.exp %92 : vector<10x16xf32>
    %cst_35 = arith.constant dense<0.000000e+00> : vector<16xf32>
    %94 = vector.multi_reduction <add>, %93, %cst_35 [0] : vector<10x16xf32> to vector<16xf32>
    %95 = vector.shape_cast %94 : vector<16xf32> to vector<1x16xf32>
    %96 = math.log %95 : vector<1x16xf32>
    %97 = arith.addf %90, %96 : vector<1x16xf32>
    %98 = arith.subf %97, %88 : vector<1x16xf32>
    %cst_36 = arith.constant 0.000000e+00 : f32
    %99 = vector.broadcast %cst_36 : f32 to vector<1x16xf32>
    %100 = arith.cmpf ogt, %11, %99 : vector<1x16xf32>
    %101 = arith.mulf %98, %11 : vector<1x16xf32>
    %cst_37 = arith.constant 0.000000e+00 : f32
    %102 = vector.broadcast %cst_37 : f32 to vector<1x16xf32>
    %103 = arith.select %100, %101, %102 : vector<1x16xi1>, vector<1x16xf32>
    %c0_38 = arith.constant 0 : index
    %c0_39 = arith.constant 0 : index
    %c0_40 = arith.constant 0 : index
    %104 = vector.load %arg5[%c0_38, %c0_39, %c0_40] : memref<1x1x16xf32, #tpu.memory_space<vmem>>, vector<1x1x16xf32>
    %105 = vector.shape_cast %104 : vector<1x1x16xf32> to vector<1x16xf32>
    %106 = vector.shape_cast %103 : vector<1x16xf32> to vector<1x1x16xf32>
    tpu.vector_store %arg5[%c0_38, %c0_39, %c0_40], %106 {strides = array<i32>} : memref<1x1x16xf32, #tpu.memory_space<vmem>>, vector<1x1x16xf32>,
    return
  }
  func.func @transform_0(%arg0: i32, %arg1: i32) -> (i32, i32, i32, i32) {
    %c0_i32 = arith.constant 0 : i32
    %c0_i32_0 = arith.constant 0 : i32
    %c0_i32_1 = arith.constant 0 : i32
    return %arg0, %c0_i32, %c0_i32_0, %arg1 : i32, i32, i32, i32
  }
  func.func @transform_1(%arg0: i32, %arg1: i32) -> (i32, i32, i32) {
    %c0_i32 = arith.constant 0 : i32
    %c0_i32_0 = arith.constant 0 : i32
    return %arg0, %c0_i32, %arg1 : i32, i32, i32
  }
  func.func @transform_2(%arg0: i32, %arg1: i32) -> (i32, i32, i32) {
    %c0_i32 = arith.constant 0 : i32
    %c0_i32_0 = arith.constant 0 : i32
    return %arg0, %c0_i32, %arg1 : i32, i32, i32
  }
  func.func @transform_3(%arg0: i32, %arg1: i32) -> (i32, i32, i32) {
    %c0_i32 = arith.constant 0 : i32
    %c0_i32_0 = arith.constant 0 : i32
    return %arg0, %c0_i32, %arg1 : i32, i32, i32
  }
}

</mosaic_0001>

<bundles_post_ra>
// kernel: tpu_custom_call.1
= control target key start
LH: loop header
LB: loop body
LE: loop exit
PB: predicated region body
PF: predicated region fallthrough
CT: control target
= control target key end

     0   :  { %8 = vsyncpa [#allocation3], 0  ;;  %s1069_s0 = inlined_call_operand.vmem [shape: f32[2,3,10,16], index: 0, kind: input, shape index: {}]   ;;  %s1070_s1 = inlined_call_operand.vmem [shape: f32[2,1,16], index: 1, kind: input, shape index: {}]   ;;  %s1071_s2 = inlined_call_operand.vmem [shape: f32[2,1,16], index: 2, kind: input, shape index: {}]   ;;  %s1072_s3 = inlined_call_operand.hbm [shape: f32[2,1,16], index: 3, kind: output, shape index: {}]  }
   0x1   :  { %10 = vsyncpa [#allocation3 + $0x1], 0  ;;  %s829_s12 = smov 0   ;;  %s831_s13 = smov 0  }
   0x2   :  { %s833_s14 = smov 0   ;;  %s835_s15 = smov 0  }
   0x3   :  { %s837_s16 = smov 0   ;;  %s839_s17 = smov 0  }
   0x4 LB: > { %s607_s18 = sadd.s32 4294967295, %s805_s17   ;;  %s608_s19 = sadd.s32 4294967294, %s805_s17   ;;  %s805_s17 = sphi %s839_s17, %s16_s17   ;;  %s801_s16 = sphi %s837_s16, %s1083_s16   ;;  %s797_s15 = sphi %s835_s15, %s1082_s15   ;;  %s793_s14 = sphi %s833_s14, %s1081_s14   ;;  %s789_s13 = sphi %s831_s13, %s1080_s13   ;;  %s785_s12 = sphi %s829_s12, %s1079_s12  }
   0x5   : > { %s28_s20 = sadd.s32 1, %s801_s16  ;;  %s121_s21 = sadd.s32 1, %s793_s14 }
   0x6   : > { %p30_p0 = scmp.ge.s32.totalorder %s28_s20, 2  ;;  %p131_p1 = scmp.ne.s32.totalorder %s793_s14, %s789_s13 }
   0x7   : > { %p132_p2 = scmp.eq.s32.totalorder %s607_s18, 1  ;;  %p137_p3 = scmp.ne.s32.totalorder %s789_s13, %s785_s12 }
   0x8   : > { %s1085_s20 = smov (%p30_p0, %s28_s20), 0  ;;  %p138_p5 = scmp.eq.s32.totalorder %s608_s19, 1 }
   0x9   : > { %p869_p4 = por %p132_p2, %p131_p1  ;;  %s116_s23 = ssub.s32 %s801_s16, %s1085_s20 }
   0xa   : > { %p611_p6 = scmp.ge.s32.totalorder %s805_s17, 1  ;;  %p119_p7 = scmp.eq.s32.totalorder %s116_s23, 0 }
   0xb   : > { %p876_p8 = por %p138_p5, %p137_p3  ;;  %p185_p9 = scmp.lt.s32.totalorder %s805_s17, 3 }
   0xc   : > { %s882_s25 = scalar_select %p119_p7, %s793_s14, %s121_s21  }
   0xd   : > { %p186_p10 = pnand %p611_p6, %p185_p9 }
   0xe   : > { %p223_p11 = scmp.lt.s32.totalorder (!%p186_p10), %s797_s15, 1  ;;  %s221_s7 = sand.u32 (!%p186_p10), 1, %s789_s13  }
   0xf   : > { %189 = sbr.rel (%p186_p10) target bundleno = 229 (0xe5), region = 32  ;;  %s621_s11 = sshll.u32 (!%p186_p10), %s797_s15, 4 }
  0x10   : > { %s222_s18 = scalar_lea.vmem (!%p186_p10), [#allocation2], %s221_s7 }
  0x11   : > { %s513_s19 = sshll.u32 (!%p186_p10), %s222_s18, 4  ;;  %s514_s19 = int_to_ptr.vmem [resolvable:$true] %s513_s19 }
  0x12   : > { %s729_s28 = scalar_lea.vmem (!%p186_p10), %s514_s19, 16 }
  0x13   : > { %p730_p12 = scmp.ne.s32.totalorder (!%p186_p10), %s514_s19, %s729_s28 }
  0x14   : > { %v256_v0 = vlaneseq  ;;  %s886_s26 = scalar_select %p223_p11, %s797_s15, 1  ;;  %v807_v4 = vmov 0   ;;  %vm437_vm6 = vcmask 130048   ;;  %vm439_vm7 = vcmask 123904  }
  0x15   : > { %p731_p13 = pnand %p730_p12, %p869_p4  ;;  %s808_s15 = smov [#allocation2]  }
  0x16   : > { %v257_v1 = vshrl.u32 %v256_v0, 7  ;;  %s624_s27 = smul.u32 48, %s886_s26  ;;  %s236_s30 = scalar_lea.vmem %s1070_s1, %s886_s26 }
  0x17   : > { %v253_v2 = vld [vmem:[%s236_s30] sm:$0x1]  ;;  %s242_s10 = scalar_lea.vmem %s1071_s2, %s886_s26  ;;  %s500_s26 = scalar_lea.sflag [#allocation3], %s221_s7 }
  0x18   : > { %s896_s6 = scalar_lea.vmem %s1069_s0, %s624_s27  ;;  %v898_v3 = vsub.s32 0, %v257_v1  ;;  %vm417_vm0 = vcmp.gt.f32.partialorder %v253_v2, 0.999  ;;  %vm426_vm1 = vcmp.lt.f32.partialorder %v253_v2, -0.999  ;;  %s1029_s27 = scalar_lea.hbm %s1072_s3, %s621_s11 }
  0x19   : > { %v900_v5 = vsel %vm417_vm0, 1, %v807_v4  ;;  %v902_v6 = vsel %vm426_vm1, 1, %v807_v4  ;;  %v905_v7 = vld [vmem:[%s896_s6 + $0x20] sm:$0xff]  ;;  %v908_v8 = vld [vmem:[%s896_s6 + $0x28] sm:$0x3]  ;;  %v613_v18 = vld [vmem:[%s896_s6 + $0x10] sm:$0xff]  ;;  %p732_p0 = pneg %p731_p13 }
  0x1a   : > { %v422_v9 = vrot.slane %v900_v5, %v898_v3  ;;  %v431_v10 = vrot.slane %v902_v6, %v898_v3  ;;  %v251_v11 = vmax.f32 %v905_v7, -32.23619  ;;  %v252_v12 = vmax.f32 %v908_v8, -32.23619  ;;  %v614_v19 = vld [vmem:[%s896_s6 + $0x18] sm:$0x3] }
  0x1b   : > { %v259_v17 = vrot.slane %v253_v2, %v898_v3  ;;  %vm497_vm1 = vcmask 122880   ;;  %s733_s29 = sshll.u32 %s808_s15, 4  ;;  %s734_s29 = int_to_ptr.vmem [resolvable:$false] %s733_s29 }
  0x1c   : > { %v263_v13 = vsub.f32 0.0, %v251_v11  ;;  %v264_v14 = vsub.f32 0.0, %v252_v12  ;;  %vm423_vm12 = vcmp.eq.s32.totalorder %v422_v9, 1  ;;  %vm999_vm13 = vcmp.eq.s32.totalorder %v431_v10, 1  ;;  %s735_s30 = scalar_lea.vmem %s734_s29, 32  ;;  %p736_p1 = scmp.lt.s32.totalorder %s514_s19, %s734_s29 }
  0x1d   : > { %v261_v20 = vsub.f32 %v259_v17, %v613_v18  ;;  %v262_v21 = vsub.f32 %v259_v17, %v614_v19  ;;  %p737_p2 = scmp.lt.s32.totalorder %s735_s30, %s729_s28 }
  0x1e   : > { %v265_v15 = vmul.f32 1.442695, %v263_v13  ;;  %v267_v16 = vmul.f32 1.442695, %v264_v14 }
  0x1f   : > { %v269_v22 = vadd.f32 0.003921569, %v261_v20  ;;  %v617_v23 = vadd.f32 -0.003921569, %v261_v20  ;;  %v270_v24 = vadd.f32 0.003921569, %v262_v21  ;;  %p738_p3 = por %p737_p2, %p736_p1 }
  0x20   : > { %681 = vpow2.f32 %v265_v15  ;;  %v618_v25 = vadd.f32 -0.003921569, %v262_v21 }
  0x21   : > { %683 = vpow2.f32 %v267_v16  ;;  %p739_p5 = pnand %p738_p3, %p732_p0 }
  0x2d   : > { %v682_v26 = vpop.eup %681 }
  0x2e   : > { %v684_v27 = vpop.eup %683  ;;  %v923_v28 = vmul.f32 %v682_v26, %v269_v22  ;;  %v925_v29 = vmul.f32 %v682_v26, %v617_v23  ;;  %v935_v44 = vmul.f32 %v682_v26, %v261_v20 }
  0x2f   : > { %v927_v30 = vmul.f32 %v684_v27, %v270_v24  ;;  %v929_v31 = vmul.f32 %v684_v27, %v618_v25  ;;  %v937_v45 = vmul.f32 %v684_v27, %v262_v21 }
  0x30   : > { %v281_v32 = vand.u32 2147483647, %v923_v28  ;;  %v311_v33 = vand.u32 2147483647, %v925_v29  ;;  %v341_v46 = vand.u32 2147483647, %v935_v44 }
  0x31   : > { %v282_v34 = vand.u32 2147483647, %v927_v30  ;;  %v312_v35 = vand.u32 2147483647, %v929_v31  ;;  %v342_v50 = vand.u32 2147483647, %v937_v45 }
  0x32   : > { %v283_v36 = vsub.f32 0.0, %v281_v32  ;;  %v313_v37 = vsub.f32 0.0, %v311_v33  ;;  %v343_v55 = vsub.f32 0.0, %v341_v46  ;;  %v279_v18 = vmax.f32 %v923_v28, 0.0 }
  0x33   : > { %v284_v38 = vsub.f32 0.0, %v282_v34  ;;  %v314_v39 = vsub.f32 0.0, %v312_v35  ;;  %v344_v57 = vsub.f32 0.0, %v342_v50  ;;  %v280_v23 = vmax.f32 %v927_v30, 0.0 }
  0x34   : > { %v285_v40 = vmul.f32 1.442695, %v283_v36  ;;  %v315_v41 = vmul.f32 1.442695, %v313_v37  ;;  %v345_v59 = vmul.f32 1.442695, %v343_v55 }
  0x35   : > { %v287_v42 = vmul.f32 1.442695, %v284_v38  ;;  %v317_v43 = vmul.f32 1.442695, %v314_v39  ;;  %v347_v62 = vmul.f32 1.442695, %v344_v57 }
  0x36   : > { %685 = vpow2.f32 %v285_v40  ;;  %v309_v32 = vmax.f32 %v925_v29, 0.0  ;;  %v310_v39 = vmax.f32 %v929_v31, 0.0 }
  0x37   : > { %687 = vpow2.f32 %v287_v42 }
  0x38   : > { %689 = vpow2.f32 %v315_v41 }
  0x39   : > { %691 = vpow2.f32 %v317_v43 }
  0x43   : > { %v686_v47 = vpop.eup %685 }
  0x44   : > { %v688_v48 = vpop.eup %687  ;;  %v289_v49 = vadd.f32 1.0, %v686_v47  ;;  %v292_v58 = vmul.f32 -0.5, %v686_v47  ;;  %v295_v1 = vand.u32 2147483647, %v686_v47 }
  0x45   : > { %v690_v51 = vpop.eup %689  ;;  %v298_v52 = vadd.f32 1.0, %v688_v48  ;;  %v301_v60 = vmul.f32 -0.5, %v688_v48  ;;  %v304_v4 = vand.u32 2147483647, %v688_v48 }
  0x46   : > { %v692_v53 = vpop.eup %691  ;;  %693 = vlog2.f32 %v289_v49  ;;  %v319_v54 = vadd.f32 1.0, %v690_v51  ;;  %v322_v61 = vmul.f32 -0.5, %v690_v51  ;;  %v293_v63 = vadd.f32 1.0, %v292_v58 }
  0x47   : > { %695 = vlog2.f32 %v298_v52  ;;  %v328_v56 = vadd.f32 1.0, %v692_v53  ;;  %v331_v0 = vmul.f32 -0.5, %v692_v53  ;;  %v302_v2 = vadd.f32 1.0, %v301_v60  ;;  %v971_v60 = vld [vmem:[%s896_s6 + $0x8] sm:$0x3] }
  0x48   : > { %697 = vlog2.f32 %v319_v54  ;;  %v323_v13 = vadd.f32 1.0, %v322_v61  ;;  %v325_v14 = vand.u32 2147483647, %v690_v51  ;;  %v294_v15 = vmul.f32 %v686_v47, %v293_v63 }
  0x49   : > { %699 = vlog2.f32 %v328_v56  ;;  %v332_v16 = vadd.f32 1.0, %v331_v0  ;;  %vm942_vm2 = vcmp.lt.f32.partialorder %v295_v1, 0.0004427343  ;;  %v303_v20 = vmul.f32 %v688_v48, %v302_v2 }
  0x4a   : > { %701 = vpow2.f32 %v345_v59  ;;  %v334_v21 = vand.u32 2147483647, %v692_v53  ;;  %vm305_vm3 = vcmp.lt.f32.partialorder %v304_v4, 0.0004427343  ;;  %v324_v25 = vmul.f32 %v690_v51, %v323_v13 }
  0x4b   : > { %703 = vpow2.f32 %v347_v62  ;;  %vm326_vm4 = vcmp.lt.f32.partialorder %v325_v14, 0.0004427343  ;;  %v333_v35 = vmul.f32 %v692_v53, %v332_v16  ;;  %v467_v61 = vsel %vm439_vm7, %v971_v60, -inf }
  0x4c   : > { %vm335_vm5 = vcmp.lt.f32.partialorder %v334_v21, 0.0004427343 }
  0x53   : > { %v694_v17 = vpop.eup %693 }
  0x54   : > { %v696_v22 = vpop.eup %695  ;;  %v291_v24 = vmul.f32 0.6931472, %v694_v17 }
  0x55   : > { %v698_v26 = vpop.eup %697  ;;  %v300_v27 = vmul.f32 0.6931472, %v696_v22 }
  0x56   : > { %v297_v33 = vsel %vm942_vm2, %v294_v15, %v291_v24  ;;  %v321_v34 = vmul.f32 0.6931472, %v698_v26  ;;  %v700_v36 = vpop.eup %699 }
  0x57   : > { %v306_v37 = vsel %vm305_vm3, %v303_v20, %v300_v27  ;;  %v307_v38 = vadd.f32 %v297_v33, %v279_v18  ;;  %v330_v42 = vmul.f32 0.6931472, %v700_v36  ;;  %v702_v48 = vpop.eup %701 }
  0x58   : > { %v308_v40 = vadd.f32 %v306_v37, %v280_v23  ;;  %v327_v41 = vsel %vm326_vm4, %v324_v25, %v321_v34  ;;  %v704_v52 = vpop.eup %703  ;;  %v352_v63 = vmul.f32 -0.5, %v702_v48  ;;  %v355_v13 = vand.u32 2147483647, %v702_v48 }
  0x59   : > { %v951_v43 = vadd.f32 %v327_v41, %v309_v32  ;;  %v954_v46 = vsub.f32 %v923_v28, %v307_v38  ;;  %v336_v47 = vsel %vm335_vm5, %v333_v35, %v330_v42  ;;  %v349_v28 = vadd.f32 1.0, %v702_v48 }
  0x5a   : > { %v956_v49 = vadd.f32 %v336_v47, %v310_v39  ;;  %v959_v50 = vsub.f32 %v927_v30, %v308_v40  ;;  %v358_v57 = vadd.f32 1.0, %v704_v52  ;;  %v968_v30 = vld [vmem:[%s896_s6] sm:$0xff]  ;;  %v361_v1 = vmul.f32 -0.5, %v704_v52 }
  0x5b   : > { %v379_v51 = vsub.f32 %v925_v29, %v951_v43  ;;  %705 = vlog2.f32 %v349_v28  ;;  %v353_v2 = vadd.f32 1.0, %v352_v63  ;;  %v364_v18 = vand.u32 2147483647, %v704_v52 }
  0x5c   : > { %v380_v53 = vsub.f32 %v929_v31, %v956_v49  ;;  %v466_v31 = vsel %vm437_vm6, %v968_v30, -inf  ;;  %v362_v16 = vadd.f32 1.0, %v361_v1  ;;  %vm356_vm8 = vcmp.lt.f32.partialorder %v355_v13, 0.0004427343 }
  0x5d   : > { %v381_v54 = vsub.f32 %v379_v51, %v954_v46  ;;  %v468_v62 = vmax.f32 %v466_v31, %v467_v61  ;;  %v354_v22 = vmul.f32 %v702_v48, %v353_v2  ;;  %v339_v32 = vmax.f32 %v935_v44, 0.0 }
  0x5e   : > { %v382_v55 = vsub.f32 %v380_v53, %v959_v50  ;;  %v363_v27 = vmul.f32 %v704_v52, %v362_v16  ;;  %vm365_vm9 = vcmp.lt.f32.partialorder %v364_v18, 0.0004427343  ;;  %v340_v35 = vmax.f32 %v937_v45, 0.0 }
  0x5f   : > { %v383_v56 = vmin.f32 %v381_v54, 0.0  ;;  %v469_v0 = vrot.slane %v468_v62, 4  ;;  %v373_v47 = vsub.f32 %v935_v44, %v251_v11  ;;  %v374_v53 = vsub.f32 %v937_v45, %v252_v12 }
  0x60   : > { %v384_v58 = vmin.f32 %v382_v55, 0.0  ;;  %v372_v13 = vsub.f32 0.0, %v956_v49 }
  0x61   : > { %v385_v59 = vmul.f32 1.442695, %v383_v56  ;;  %v470_v14 = vmax.f32 %v468_v62, %v469_v0  ;;  %v371_v62 = vsub.f32 0.0, %v951_v43 }
  0x62   : > { %v387_v29 = vmul.f32 1.442695, %v384_v58 }
  0x63   : > { %707 = vpow2.f32 %v385_v59  ;;  %v471_v25 = vrot.slane %v470_v14, 2 }
  0x64   : > { %709 = vlog2.f32 %v358_v57 }
  0x65   : > { %711 = vpow2.f32 %v387_v29  ;;  %v472_v36 = vmax.f32 %v470_v14, %v471_v25 }
  0x67   : > { %v473_v42 = vrot.slane %v472_v36, 1 }
  0x68   : > { %v706_v4 = vpop.eup %705 }
  0x69   : > { %v351_v21 = vmul.f32 0.6931472, %v706_v4  ;;  %v985_v55 = vmax.f32 %v472_v36, %v473_v42 }
  0x6b   : > { %v357_v34 = vsel %vm356_vm8, %v354_v22, %v351_v21  ;;  %v475_v11 = vsub.f32 %v968_v30, %v985_v55  ;;  %v476_v8 = vsub.f32 %v971_v60, %v985_v55 }
  0x6c   : > { %v367_v38 = vadd.f32 %v357_v34, %v339_v32 }
  0x6d   : > { %v477_v4 = vmul.f32 1.442695, %v475_v11  ;;  %v479_v14 = vmul.f32 1.442695, %v476_v8  ;;  %v254_v11 = vld [vmem:[%s242_s10] sm:$0x1] }
  0x6e   : > { %v375_v48 = vmul.f32 2.0, %v367_v38  ;;  %vm494_vm0 = vcmp.gt.f32.partialorder %v254_v11, 0.0 }
  0x70   : > { %v708_v15 = vpop.eup %707  ;;  %v377_v57 = vsub.f32 %v373_v47, %v375_v48 }
  0x71   : > { %v710_v17 = vpop.eup %709  ;;  %v389_v19 = vsub.f32 0.0, %v708_v15 }
  0x72   : > { %v712_v20 = vpop.eup %711  ;;  %v360_v26 = vmul.f32 0.6931472, %v710_v17  ;;  %v619_v61 = vadd.f32 -4.8481164, %v377_v57 }
  0x73   : > { %v390_v23 = vsub.f32 0.0, %v712_v20  ;;  %v391_v24 = vadd.f32 1.0, %v389_v19  ;;  %v394_v39 = vmul.f32 -0.5, %v389_v19  ;;  %v397_v52 = vand.u32 2147483647, %v389_v19 }
  0x74   : > { %v366_v37 = vsel %vm365_vm9, %v363_v27, %v360_v26 }
  0x75   : > { %713 = vlog2.f32 %v391_v24  ;;  %v400_v33 = vadd.f32 1.0, %v390_v23  ;;  %v368_v40 = vadd.f32 %v366_v37, %v340_v35  ;;  %v403_v41 = vmul.f32 -0.5, %v390_v23 }
  0x76   : > { %v395_v51 = vadd.f32 1.0, %v394_v39  ;;  %v406_v56 = vand.u32 2147483647, %v390_v23  ;;  %vm398_vm10 = vcmp.lt.f32.partialorder %v397_v52, 0.0004427343 }
  0x77   : > { %715 = vlog2.f32 %v400_v33  ;;  %v376_v54 = vmul.f32 2.0, %v368_v40  ;;  %v404_v28 = vadd.f32 1.0, %v403_v41 }
  0x78   : > { %v396_v58 = vmul.f32 %v395_v51, %v389_v19  ;;  %vm407_vm11 = vcmp.lt.f32.partialorder %v406_v56, 0.0004427343  ;;  %717 = vpow2.f32 %v477_v4 }
  0x79   : > { %v378_v29 = vsub.f32 %v374_v53, %v376_v54  ;;  %v405_v31 = vmul.f32 %v404_v28, %v390_v23  ;;  %719 = vpow2.f32 %v479_v14 }
  0x7b   : > { %v620_v1 = vadd.f32 -4.8481164, %v378_v29 }
  0x82   : > { %v714_v59 = vpop.eup %713 }
  0x83   : > { %v393_v7 = vmul.f32 0.6931472, %v714_v59 }
  0x84   : > { %v716_v44 = vpop.eup %715 }
  0x85   : > { %v399_v12 = vsel %vm398_vm10, %v396_v58, %v393_v7  ;;  %v402_v45 = vmul.f32 0.6931472, %v716_v44 }
  0x86   : > { %v409_v63 = vadd.f32 %v399_v12, %v954_v46 }
  0x87   : > { %v408_v0 = vsel %vm407_vm11, %v405_v31, %v402_v45 }
  0x88   : > { %v410_v43 = vadd.f32 %v408_v0, %v959_v50  ;;  %vm411_vm14 = vcmp.gt.f32.partialorder %v409_v63, -11.512925 }
  0x89   : > { %v415_v15 = vsel %vm411_vm14, %v409_v63, %v619_v61 }
  0x8a   : > { %vm412_vm15 = vcmp.gt.f32.partialorder %v410_v43, -11.512925  ;;  %v424_v5 = vsel %vm423_vm12, %v371_v62, %v415_v15 }
  0x8b   : > { %v416_v9 = vsel %vm412_vm15, %v410_v43, %v620_v1  ;;  %v433_v16 = vsel %vm999_vm13, %v954_v46, %v424_v5  ;;  %v718_v46 = vpop.eup %717 }
  0x8c   : > { %v425_v3 = vsel %vm423_vm12, %v372_v13, %v416_v9  ;;  %v435_v6 = vadd.f32 %v433_v16, %v968_v30  ;;  %v720_v23 = vpop.eup %719  ;;  %v481_v30 = vsel %vm437_vm6, %v718_v46, 0.0 }
  0x8d   : > { %v434_v10 = vsel %vm999_vm13, %v959_v50, %v425_v3  ;;  %v482_v26 = vsel %vm439_vm7, %v720_v23, 0.0 }
  0x8e   : > { %v436_v49 = vadd.f32 %v434_v10, %v971_v60  ;;  %v438_v17 = vsel %vm437_vm6, %v435_v6, -inf  ;;  %v483_v60 = vadd.f32 %v482_v26, %v481_v30 }
  0x90   : > { %v440_v18 = vsel %vm439_vm7, %v436_v49, -inf  ;;  %v484_v35 = vrot.slane %v483_v60, 4 }
  0x91   : > { %v441_v19 = vmax.f32 %v438_v17, %v440_v18 }
  0x92   : > { %v485_v36 = vadd.f32 %v484_v35, %v483_v60 }
  0x93   : > { %v442_v20 = vrot.slane %v441_v19, 4 }
  0x94   : > { %v486_v37 = vrot.slane %v485_v36, 2 }
  0x95   : > { %v443_v21 = vmax.f32 %v441_v19, %v442_v20 }
  0x96   : > { %v487_v38 = vadd.f32 %v486_v37, %v485_v36 }
  0x97   : > { %v444_v22 = vrot.slane %v443_v21, 2 }
  0x98   : > { %v488_v48 = vrot.slane %v487_v38, 1 }
  0x99   : > { %v445_v24 = vmax.f32 %v443_v21, %v444_v22 }
  0x9a   : > { %v489_v53 = vadd.f32 %v488_v48, %v487_v38 }
  0x9b   : > { %v446_v25 = vrot.slane %v445_v24, 1 }
  0x9d   : > { %v447_v27 = vmax.f32 %v445_v24, %v446_v25 }
  0x9f   : > { %v448_v50 = vsub.f32 %v435_v6, %v447_v27  ;;  %v449_v32 = vsub.f32 %v436_v49, %v447_v27 }
  0xa1   : > { %v450_v33 = vmul.f32 1.442695, %v448_v50  ;;  %v452_v34 = vmul.f32 1.442695, %v449_v32 }
  0xa3   : > { %721 = vpow2.f32 %v450_v33 }
  0xa4   : > { %723 = vpow2.f32 %v452_v34 }
  0xa5   : > { %725 = vlog2.f32 %v489_v53 }
  0xb0   : > { %v722_v39 = vpop.eup %721 }
  0xb1   : > { %v724_v40 = vpop.eup %723  ;;  %v454_v41 = vsel %vm437_vm6, %v722_v39, 0.0 }
  0xb2   : > { %v455_v42 = vsel %vm439_vm7, %v724_v40, 0.0  ;;  %v726_v58 = vpop.eup %725 }
  0xb3   : > { %v456_v47 = vadd.f32 %v455_v42, %v454_v41  ;;  %v491_v59 = vmul.f32 0.6931472, %v726_v58 }
  0xb5   : > { %v457_v51 = vrot.slane %v456_v47, 4  ;;  %v492_v31 = vadd.f32 %v491_v59, %v985_v55 }
  0xb7   : > { %v458_v52 = vadd.f32 %v457_v51, %v456_v47 }
  0xb9   : > { %v459_v54 = vrot.slane %v458_v52, 2 }
  0xbb   : > { %v460_v28 = vadd.f32 %v459_v54, %v458_v52 }
  0xbd   : > { %v461_v56 = vrot.slane %v460_v28, 1 }
  0xbf   : > { %v462_v57 = vadd.f32 %v461_v56, %v460_v28 }
  0xc1   : > { %727 = vlog2.f32 %v462_v57 }
  0xce   : > { %v728_v29 = vpop.eup %727 }
  0xcf   : > { %v464_v7 = vmul.f32 0.6931472, %v728_v29 }
  0xd1   : > { %v465_v44 = vadd.f32 %v464_v7, %v447_v27 }
  0xd3   : > { %v493_v8 = vsub.f32 %v492_v31, %v465_v44 }
  0xd5   : > { %v495_v12 = vmul.f32 %v493_v8, %v254_v11 }
  0xd7   : > { %v496_v45 = vsel %vm494_vm0, %v495_v12, 0.0 }
  0xd8   : > { %498 = vst.msk [vmem:[%s222_s18] sm:$0x1] %vm497_vm1, %v496_v45 }
  0xd9   : > { %742 = shalt.err (!%p739_p5)
}
  0xda   : > { %s743_s4 = scalar_lea.hbm %s1029_s27, 16  ;;  %s747_s7 = scalar_lea.hbm %s1072_s3, 32 }
  0xdb   : > { %p744_p6 = scmp.ne.s32.totalorder %s1029_s27, %s743_s4  ;;  %p748_p10 = scmp.lt.s32.totalorder %s1029_s27, %s1072_s3 }
  0xdc   : > { %p749_p11 = scmp.lt.s32.totalorder %s747_s7, %s743_s4 }
  0xdd   : > { %p745_p7 = pnand %p744_p6, %p869_p4 }
  0xde   : > { %p750_p12 = por %p749_p11, %p748_p10 }
  0xdf   : > { %p746_p9 = pneg %p745_p7 }
  0xe1   : > { %p751_p13 = pnand %p750_p12, %p746_p9 }
  0xe3   : > { %754 = shalt.err (!%p751_p13)
}
  0xe4   : > { %625 = dma.vmem_to_hbm [thread:$0]  (%p869_p4), %s514_s19, 16, %s1029_s27, %s500_s26  }
  0xe5 PF: > { %p631_p0 = scmp.ge.s32.totalorder %s805_s17, 2  ;;  %s525_s10 = sand.u32 1, %s785_s12  }
  0xe6   : > { %s526_s11 = scalar_lea.sflag [#allocation3], %s525_s10 }
  0xe7   : > { %p628_p1 = pnand %p631_p0, %p876_p8 }
  0xe9   : > { %p629_p2 = pneg %p628_p1 }
  0xeb   : > { %780 = dma.done.wait (%p629_p2), %s526_s11, 16  }
  0xec   : > { %782 = vsyncadd (%p629_p2), %s526_s11, 4294967280  ;;  %s16_s17 = sadd.s32 1, %s805_s17   ;;  %s1079_s12 = smov %s789_s13 }
  0xed   : > { %p13_p3 = scmp.ge.s32.totalorder %s16_s17, 4   ;;  %s1080_s13 = smov %s793_s14 }
  0xee   : > { %s1081_s14 = smov %s882_s25  ;;  %s1082_s15 = smov %s801_s16 }
  0xef   : > { %s1083_s16 = smov %s1085_s20  ;;  %15 = sbr.rel (!%p13_p3) target bundleno = 4 (0x4), region = 75 }
  0xf4   :  { %530 = vsyncpa [#allocation3], 1 }
  0xf5   :  { %532 = vsyncpa [#allocation3 + $0x1], 1 }

</bundles_post_ra>
